<compile_context>
chip_gen: v7x
topology: tpu7x:2x2x1
jax: 0.10.0
libtpu: 0.0.40
codegen_flags: <defaults>
</compile_context>

<pallas_src>
import jax
import jax.numpy as jnp
from jax.experimental import pallas as pl
from jax.experimental.pallas import tpu as pltpu


def _fused_affine_kernel(h_ref, w_ref, b_ref, o_ref):
    """Fused affine layer: o = h @ W + b, entirely in VMEM.

    h_ref: (TB, in_dim)   activation row-tile (pipelined over the grid)
    w_ref: (in_dim, Npad) fused weight, resident across the grid
    b_ref: (1, Npad)      fused bias, resident across the grid
    o_ref: (TB, Npad)     lane-dense output slab
    """
    o_ref[...] = (
        jnp.dot(h_ref[...], w_ref[...], preferred_element_type=jnp.float32)
        + b_ref[...]
    ).astype(o_ref.dtype)


def _round_up(x, m):
    return ((x + m - 1) // m) * m


def simple_fc_forward(x, x_len, mfcc_feat, mfcc_feat_len, handcrafted_features,
                      params, *, block_rows=1024):
    """Pallas implementation of Simple_FC.forward.

    Only `handcrafted_features` (B, input_size) participates in the compute,
    matching the PyTorch module exactly.  Returns (B, output_size) float32.
    """
    del x, x_len, mfcc_feat, mfcc_feat_len  # unused, as in the reference module
    w1, b1, w2, b2, w3, b3 = params

    # Algebraic fusion of the 3 linear layers (exact: no activation between
    # them).  These are tiny, static-per-call XLA ops outside the kernel.
    w_fused = w1 @ w2 @ w3                     # (in_dim, out_dim)
    b_fused = (b1 @ w2 + b2) @ w3 + b3         # (1, out_dim)

    B, in_dim = handcrafted_features.shape
    out_dim = w_fused.shape[1]

    # Lane-dense output: pad N up to a multiple of 128 so the output stores are
    # full-width vst (the wrapper slices the real columns back out).
    n_pad = _round_up(max(out_dim, 1), 128)
    if n_pad != out_dim:
        w_fused = jnp.pad(w_fused, ((0, 0), (0, n_pad - out_dim)))
        b_fused = jnp.pad(b_fused, ((0, 0), (0, n_pad - out_dim)))

    # Row tile: multiple of 8 sublanes, capped at `block_rows`.  Per-grid-step
    # overhead is ~0.35 us, so larger tiles amortize it; at TB=1024 the
    # double-buffered working set is still < 1.5 MiB of VMEM.
    tb = min(block_rows, _round_up(B, 8))
    grid = (pl.cdiv(B, tb),)

    out_padded = pl.pallas_call(
        _fused_affine_kernel,
        out_shape=jax.ShapeDtypeStruct((B, n_pad), jnp.float32),
        grid=grid,
        in_specs=[
            pl.BlockSpec((tb, in_dim), lambda i: (i, 0)),      # activations: tiled
            pl.BlockSpec((in_dim, n_pad), lambda i: (0, 0)),   # fused W: resident
            pl.BlockSpec((1, n_pad), lambda i: (0, 0)),        # fused b: resident
        ],
        out_specs=pl.BlockSpec((tb, n_pad), lambda i: (i, 0)),
        compiler_params=pltpu.CompilerParams(
            dimension_semantics=("parallel",)),
    )(handcrafted_features, w_fused, b_fused)

    if n_pad == out_dim:
        return out_padded
    return out_padded[:, :out_dim]


def init_simple_fc_params(key, input_size, output_size, hidden_sizes=None):
    """Deterministic PyTorch-Linear-style init (uniform +/- 1/sqrt(fan_in)).

    Weights are stored as (in_features, out_features) so math is y = x @ W + b
    (== PyTorch's x @ W_pt.T + b).  Biases are kept 2-D as (1, out_features).
    """
    hidden_sizes = list(hidden_sizes) if hidden_sizes else [9, 9]
    hidden_sizes = hidden_sizes + [output_size]

    params = []
    latest = input_size
    for size in hidden_sizes:
        key, kw, kb = jax.random.split(key, 3)
        bound = 1.0 / jnp.sqrt(jnp.float32(latest))
        w = jax.random.uniform(kw, (latest, size), jnp.float32, -bound, bound)
        b = jax.random.uniform(kb, (1, size), jnp.float32, -bound, bound)
        params += [w, b]
        latest = size
    return tuple(params)


def _reference_forward(handcrafted_features, params):
    """Un-fused pure-JAX reference matching the PyTorch layer chain."""
    w1, b1, w2, b2, w3, b3 = params
    y = handcrafted_features @ w1 + b1
    y = y @ w2 + b2
    y = y @ w3 + b3
    return y


if __name__ == "__main__":
    key = jax.random.PRNGKey(0)

    batch = 2
    seq_len = 8
    input_size = 32
    output_size = 8

    k1, k2, k3, k4, kp = jax.random.split(key, 5)
    # Unused-but-present inputs (match the PyTorch forward signature).
    x = jax.random.normal(k1, (batch, seq_len, input_size), jnp.float32)
    x_len = jnp.full((batch,), seq_len, dtype=jnp.int32)
    mfcc_feat = jax.random.normal(k2, (batch, seq_len, 13), jnp.float32)
    mfcc_feat_len = jnp.full((batch,), seq_len, dtype=jnp.int32)
    # The tensor that actually flows through the network.
    handcrafted_features = jax.random.normal(k3, (batch, input_size), jnp.float32)

    params = init_simple_fc_params(kp, input_size, output_size)

    out = simple_fc_forward(
        x, x_len, mfcc_feat, mfcc_feat_len, handcrafted_features, params
    )
    out = jax.block_until_ready(out)

    ref = _reference_forward(handcrafted_features, params)
    assert out.shape == (batch, output_size)
    assert jnp.allclose(out, ref, atol=1e-5, rtol=1e-4)

    # Exercise the multi-tile grid path (two 1024-row tiles) as well.
    big_b = 2048
    big_h = jax.random.normal(k4, (big_b, input_size), jnp.float32)
    big_out = simple_fc_forward(None, None, None, None, big_h, params)
    big_out = jax.block_until_ready(big_out)
    big_ref = _reference_forward(big_h, params)
    assert big_out.shape == (big_b, output_size)
    assert jnp.allclose(big_out, big_ref, atol=1e-5, rtol=1e-4)

    print("KERNEL_OK")
</pallas_src>

<mosaic_0001>
module attributes {stable_mosaic.version = 11 : i64} {
  func.func @_fused_affine_kernel(%arg0: i32, %arg1: memref<8x32xf32, #tpu.memory_space<vmem>>, %arg2: memref<32x128xf32, #tpu.memory_space<vmem>>, %arg3: memref<1x128xf32, #tpu.memory_space<vmem>>, %arg4: memref<8x128xf32, #tpu.memory_space<vmem>>) attributes {dimension_semantics = [#tpu.dimension_semantics<parallel>], iteration_bounds = array<i64: 1>, scalar_prefetch = 0 : i64, scratch_operands = 0 : i64, tpu.core_type = #tpu.core_type<tc>, window_params = [{transform_indices = @transform_0, window_bounds = array<i64: 8, 32>}, {pipeline_mode = #tpu.pipeline_mode<synchronous>, transform_indices = @transform_1, window_bounds = array<i64: 32, 128>}, {pipeline_mode = #tpu.pipeline_mode<synchronous>, transform_indices = @transform_2, window_bounds = array<i64: 1, 128>}, {transform_indices = @transform_3, window_bounds = array<i64: 8, 128>}]} {
    %c0 = arith.constant 0 : index
    %c0_0 = arith.constant 0 : index
    %0 = vector.load %arg1[%c0, %c0_0] : memref<8x32xf32, #tpu.memory_space<vmem>>, vector<8x32xf32>
    %c0_1 = arith.constant 0 : index
    %c0_2 = arith.constant 0 : index
    %1 = vector.load %arg2[%c0_1, %c0_2] : memref<32x128xf32, #tpu.memory_space<vmem>>, vector<32x128xf32>
    %cst = arith.constant dense<0.000000e+00> : vector<8x128xf32>
    %2 = tpu.matmul %0, %1, %cst {dimension_numbers = #tpu.dot_dimension_numbers<[1], [0], [0], [1], [0, 0, 1, 1], [], []>} : vector<8x32xf32>, vector<32x128xf32>, vector<8x128xf32> -> vector<8x128xf32>
    %c0_3 = arith.constant 0 : index
    %c0_4 = arith.constant 0 : index
    %3 = vector.load %arg3[%c0_3, %c0_4] : memref<1x128xf32, #tpu.memory_space<vmem>>, vector<1x128xf32>
    %4 = vector.broadcast %3 : vector<1x128xf32> to vector<8x128xf32>
    %5 = arith.addf %2, %4 : vector<8x128xf32>
    %c0_5 = arith.constant 0 : index
    %c0_6 = arith.constant 0 : index
    %6 = vector.load %arg4[%c0_5, %c0_6] : memref<8x128xf32, #tpu.memory_space<vmem>>, vector<8x128xf32>
    tpu.vector_store %arg4[%c0_5, %c0_6], %5 {strides = array<i32>} : memref<8x128xf32, #tpu.memory_space<vmem>>, vector<8x128xf32>,
    return
  }
  func.func @transform_0(%arg0: i32) -> (i32, i32) {
    %c0_i32 = arith.constant 0 : i32
    %c0_i32_0 = arith.constant 0 : i32
    return %arg0, %c0_i32 : i32, i32
  }
  func.func @transform_1(%arg0: i32) -> (i32, i32) {
    %c0_i32 = arith.constant 0 : i32
    %c0_i32_0 = arith.constant 0 : i32
    %c0_i32_1 = arith.constant 0 : i32
    return %c0_i32, %c0_i32_0 : i32, i32
  }
  func.func @transform_2(%arg0: i32) -> (i32, i32) {
    %c0_i32 = arith.constant 0 : i32
    %c0_i32_0 = arith.constant 0 : i32
    %c0_i32_1 = arith.constant 0 : i32
    return %c0_i32, %c0_i32_0 : i32, i32
  }
  func.func @transform_3(%arg0: i32) -> (i32, i32) {
    %c0_i32 = arith.constant 0 : i32
    %c0_i32_0 = arith.constant 0 : i32
    return %arg0, %c0_i32 : i32, i32
  }
}

</mosaic_0001>

<bundles_post_ra>
// kernel: tpu_custom_call.1
= control target key start
LH: loop header
LB: loop body
LE: loop exit
PB: predicated region body
PF: predicated region fallthrough
CT: control target
= control target key end

     0   :  { %8 = vsyncpa [#allocation3], 0  ;;  %s329_s0 = inlined_call_operand.hbm [shape: f32[2,32], index: 0, kind: input, shape index: {}]   ;;  %s330_s1 = inlined_call_operand.hbm [shape: f32[32,128], index: 1, kind: input, shape index: {}]   ;;  %s331_s2 = inlined_call_operand.vmem [shape: f32[1,128], index: 2, kind: input, shape index: {}]   ;;  %s332_s3 = inlined_call_operand.hbm [shape: f32[2,128], index: 3, kind: output, shape index: {}]  }
   0x1   :  { %9 = vsyncpa [#allocation6], 0 }
   0x2   :  { %10 = vsyncpa [#allocation4], 0 }
   0x3   :  { %15 = vsyncadd [#allocation3], 96  ;;  %s254_s12 = smov [#allocation2]   ;;  %s182_s16 = scalar_lea.hbm %s329_s0, 32 }
   0x4   :  { %s16_s13 = sshll.u32 %s254_s12, 4  ;;  %p183_p0 = scmp.ne.s32.totalorder %s329_s0, %s182_s16  ;;  %s17_s13 = int_to_ptr.vmem [resolvable:$true] %s16_s13 }
   0x5   :  { %p186_p1 = scmp.lt.u32.totalorder %s182_s16, %s329_s0 }
   0x7   :  { %p188_p2 = pnand %p186_p1, %p183_p0 }
   0x9   :  { %191 = shalt.err (!%p188_p2)
}
   0xa   :  { %s192_s21 = scalar_lea.vmem %s17_s13, 32  ;;  %s196_s22 = scalar_lea.vmem %s17_s13, 128 }
   0xb   :  { %p193_p3 = scmp.ne.s32.totalorder %s17_s13, %s192_s21  ;;  %p197_p4 = scmp.lt.s32.totalorder %s17_s13, %s17_s13 }
   0xc   :  { %p198_p5 = scmp.lt.s32.totalorder %s196_s22, %s192_s21 }
   0xe   :  { %p199_p6 = por %p198_p5, %p197_p4 }
  0x10   :  { %p200_p7 = pnand %p199_p6, %p193_p3 }
  0x12   :  { %203 = shalt.err (!%p200_p7)
}
  0x13   :  { %s255_s23 = smov 32   ;;  %s256_s24 = smov 2  }
  0x14   :  { %22 = dma.hbm_to_vmem [thread:$0]  %s329_s0, 32, %s17_s13, [#allocation3], %s255_s23, %s255_s23, %s256_s24  }
  0x15   :  { %s257_s27 = smov [#allocation5]   ;;  %s204_s4 = scalar_lea.hbm %s330_s1, 512 }
  0x16   :  { %s28_s28 = sshll.u32 %s257_s27, 4  ;;  %p205_p8 = scmp.ne.s32.totalorder %s330_s1, %s204_s4  ;;  %s29_s28 = int_to_ptr.vmem [resolvable:$true] %s28_s28 }
  0x17   :  { %p208_p9 = scmp.lt.u32.totalorder %s204_s4, %s330_s1 }
  0x19   :  { %p210_p10 = pnand %p208_p9, %p205_p8 }
  0x1b   :  { %213 = shalt.err (!%p210_p10)
}
  0x1c   :  { %s214_s9 = scalar_lea.vmem %s29_s28, 512  ;;  %p219_p12 = scmp.lt.s32.totalorder %s29_s28, %s29_s28 }
  0x1d   :  { %p215_p11 = scmp.ne.s32.totalorder %s29_s28, %s214_s9  ;;  %p220_p13 = scmp.lt.s32.totalorder %s214_s9, %s214_s9 }
  0x1f   :  { %p221_p0 = por %p220_p13, %p219_p12 }
  0x21   :  { %p222_p1 = pnand %p221_p0, %p215_p11 }
  0x23   :  { %225 = shalt.err (!%p222_p1)
}
  0x24   :  { %s258_s0 = smov 128   ;;  %s259_s10 = smov 8  }
  0x25   :  { %34 = dma.hbm_to_vmem [thread:$0]  %s330_s1, 512, %s29_s28, [#allocation6], %s258_s0, %s258_s0, %s259_s10  }
  0x26   :  { %248 = dma.done.wait [#allocation3], 128  }
  0x27   :  { %249 = vsyncadd [#allocation3], 4294967168 }
  0x28   :  { %250 = dma.done.wait [#allocation6], 512  }
  0x29   :  { %251 = vsyncadd [#allocation6], 4294966784  ;;  %v260_v0 = vmov 0.0|0.0   ;;  %vm261_vm0 = vmmov 0   ;;  %v262_v1 = vmov 0.0   ;;  %v44_v2 = vld [vmem:[#allocation5] sm:$0xff] }
  0x2a   :  { %166 = vmatprep.subr.bf16.mxu0 %v260_v0  ;;  %163 = vmatprep.mubr.msk.f32.mxu0 %vm261_vm0, %v262_v1  ;;  %v45_v3 = vld [vmem:[#allocation5 + $0x8] sm:$0xff]  ;;  %v46_v4 = vld [vmem:[#allocation5 + $0x10] sm:$0xff]  ;;  %v47_v6 = vld [vmem:[#allocation5 + $0x18] sm:$0xff]  ;;  %vm55_vm1 = vcmask 261120  }
  0x2b   :  { %v167_v5 = vpack.c.bf16 %v45_v3, %v44_v2  ;;  %v170_v7 = vpack.c.bf16 %v47_v6, %v46_v4  ;;  %v43_v8 = vld [vmem:[#allocation2] sm:$0xff] }
  0x2c   :  { %v148_v9 = vld [vmem:[%s331_s2] ss:$0 sm:$0xff] }
  0x2d   :  { %168 = vmatpush3.bf16.msra.mxu0 %v167_v5 }
  0x2e   :  { %169 = vmatprep.subr.bf16.mxu0 %v260_v0 }
  0x31   :  { %171 = vmatpush3.bf16.msra.mxu0 %v170_v7 }
  0x34   :  { %164 = vmatmul.mubr.msk.f32.vlgmr.msra.gmra.mrb[0].mxu0 %vm55_vm1, %v43_v8 }
 0x107   :  { %v125_v10 = vpop.f32.mrb[0].mxu0 }
 0x108   :  { %v126_v11 = vadd.f32 %v148_v9, %v125_v10  ;;  %v165_v12 = vpop.f32.mrb[1].mxu0 }
 0x10a   :  { %129 = vst [vmem:[#allocation7] sm:$0xff] %v126_v11 }
 0x10b   :  { %134 = vsyncadd [#allocation4], 96  ;;  %s263_s14 = smov [#allocation7]  }
 0x10c   :  { %s135_s15 = sshll.u32 %s263_s14, 4  ;;  %s136_s15 = int_to_ptr.vmem [resolvable:$true] %s135_s15 }
 0x10d   :  { %s226_s16 = scalar_lea.vmem %s136_s15, 32  ;;  %s230_s17 = scalar_lea.vmem %s136_s15, 128 }
 0x10e   :  { %p227_p2 = scmp.ne.s32.totalorder %s136_s15, %s226_s16  ;;  %p231_p3 = scmp.lt.s32.totalorder %s136_s15, %s136_s15 }
 0x10f   :  { %p232_p4 = scmp.lt.s32.totalorder %s230_s17, %s226_s16 }
 0x111   :  { %p233_p5 = por %p232_p4, %p231_p3 }
 0x113   :  { %p234_p6 = pnand %p233_p5, %p227_p2 }
 0x115   :  { %237 = shalt.err (!%p234_p6)
}
 0x116   :  { %s238_s2 = scalar_lea.hbm %s332_s3, 32 }
 0x117   :  { %p239_p7 = scmp.ne.s32.totalorder %s332_s3, %s238_s2  ;;  %p242_p8 = scmp.lt.u32.totalorder %s238_s2, %s332_s3 }
 0x119   :  { %p244_p9 = pnand %p242_p8, %p239_p7 }
 0x11b   :  { %247 = shalt.err (!%p244_p9)
}
 0x11c   :  { %141 = dma.vmem_to_hbm [thread:$0]  %s136_s15, 32, %s332_s3, [#allocation4], %s255_s23, %s255_s23, %s256_s24  }
 0x11d   :  { %252 = dma.done.wait [#allocation4], 128  }
 0x11e   :  { %253 = vsyncadd [#allocation4], 4294967168 }
 0x11f   :  { %145 = vsyncpa [#allocation3], 1 }
 0x120   :  { %146 = vsyncpa [#allocation6], 1 }
 0x121   :  { %147 = vsyncpa [#allocation4], 1 }

</bundles_post_ra>
